<compile_context>
chip_gen: v7x
topology: tpu7x:2x2x1
jax: 0.10.0
libtpu: 0.0.40
codegen_flags: <defaults>
</compile_context>

<pallas_src>
import functools

import jax
import jax.numpy as jnp
from jax.experimental import pallas as pl
from jax.experimental.pallas import tpu as pltpu


def head_kernel(x_ref, w_ref, o_ref, *, hp):
    # x_ref: (Bb, T, C)   bf16 block of batch elements
    # w_ref: (C, 3*Hp)    bf16 fused [q | k | v] weights, q already scaled by H^-0.5
    # o_ref: (Bb, T, Hp)  lane-dense output block (sliced to H in the wrapper)
    bb, t, c = x_ref.shape
    bt = bb * t

    x = x_ref[...]                      # bf16, no up-cast before the matmul
    w = w_ref[...]                      # bf16

    # Fused QKV projection: one MXU matmul with M = Bb*T, N = 3*Hp (lane-dense),
    # f32 accumulation on the MXU.
    qkv = jax.lax.dot_general(
        x.reshape(bt, c), w,
        dimension_numbers=(((1,), (0,)), ((), ())),
        preferred_element_type=jnp.float32,
    )                                   # (Bb*T, 3*Hp), f32

    # 128-aligned lane slices (padding was zero-filled in the wrapper); drop back to
    # bf16 for the attention matmuls.
    q = qkv[:, 0 * hp:1 * hp].astype(jnp.bfloat16).reshape(bb, t, hp)
    k = qkv[:, 1 * hp:2 * hp].astype(jnp.bfloat16).reshape(bb, t, hp)
    v = qkv[:, 2 * hp:3 * hp].astype(jnp.bfloat16).reshape(bb, t, hp)

    # Scores: contract the head dim directly (no explicit k transpose), f32 acc.
    wei = jax.lax.dot_general(
        q, k,
        dimension_numbers=(((2,), (2,)), ((0,), (0,))),
        preferred_element_type=jnp.float32,
    )                                   # (Bb, T, T), f32

    # Additive causal mask built once at (T, T): 0 on/below the diagonal, -1e30 above.
    # Large finite negative (instead of -inf) so exp underflows to exactly 0 without NaNs.
    row = jax.lax.broadcasted_iota(jnp.int32, (t, t), 0)
    col = jax.lax.broadcasted_iota(jnp.int32, (t, t), 1)
    mask = jnp.where(col <= row, jnp.float32(0.0), jnp.float32(-1e30))
    wei = wei + mask[None, :, :]

    # Numerically-stable softmax statistics in f32; normalization deferred until after
    # the P.V matmul so the divide becomes an O(T*Hp) multiply.
    m = jnp.max(wei, axis=-1, keepdims=True)
    e = jnp.exp(wei - m)                # (Bb, T, T), f32
    s = jnp.sum(e, axis=-1, keepdims=True)

    out = jax.lax.dot_general(
        e.astype(jnp.bfloat16), v,
        dimension_numbers=(((2,), (1,)), ((0,), (0,))),
        preferred_element_type=jnp.float32,
    )                                   # (Bb, T, Hp), f32

    # Exact reciprocal: s holds only Bb*T values, approx buys nothing and costs accuracy.
    out = out * pl.reciprocal(s, approx=False)

    o_ref[...] = out.astype(o_ref.dtype)   # full Hp lanes -> unmasked, lane-dense store


def head_forward(x, w_key, w_query, w_value, *, block_b=None, vmem_budget_bytes=None):
    """x: (B, T, C); w_*: (head_size, n_embd). Returns (B, T, head_size)."""
    B, T, C = x.shape
    H = w_key.shape[0]
    Hp = ((H + 127) // 128) * 128           # pad head dim to a full 128-lane vreg
    out_dtype = x.dtype
    out_bytes = jnp.dtype(out_dtype).itemsize

    # Fold the attention scale into the query weight (in f32, then downcast); fuse +
    # zero-pad the three projections into a single lane-dense bf16 weight.
    scale = jnp.float32(H) ** -0.5

    def prep(w, s=None):                    # (H, C) -> (C, Hp) bf16, zero-padded lanes
        wt = w.astype(jnp.float32).T
        if s is not None:
            wt = wt * s
        wt = jnp.pad(wt, ((0, 0), (0, Hp - H)))
        return wt.astype(jnp.bfloat16)

    w_qkv = jnp.concatenate(
        [prep(w_query, scale), prep(w_key), prep(w_value)], axis=1)   # (C, 3*Hp) bf16
    x_bf16 = x.astype(jnp.bfloat16)

    # --- VMEM-budget-aware batch blocking -------------------------------------------
    if vmem_budget_bytes is None:
        # Conservative across v5e (16 MiB scoped default) / v6e (32) / v7x (32/64).
        vmem_budget_bytes = 20 * 1024 * 1024

    def live_bytes(bb):
        xin = 2 * bb * T * C * 2                       # bf16 input, double-buffered
        wgt = 2 * C * 3 * Hp * 2                       # bf16 fused weight (2 bufs, safe)
        out = 2 * bb * T * Hp * out_bytes              # lane-dense output, double-buffered
        qkv = bb * T * 3 * Hp * (4 + 2)                # f32 qkv + bf16 q/k/v copies
        scr = bb * T * T * (4 + 4 + 2)                 # wei f32 + e f32 + e bf16
        msk = T * T * 4
        return xin + wgt + out + qkv + scr + msk

    if block_b is None:
        cap = max(1, B // 2)                # >= 2 grid steps so v7x's 2 TCs both work
        block_b = 1
        for d in range(1, cap + 1):
            if B % d:
                continue
            if live_bytes(d) > vmem_budget_bytes:
                break
            block_b = d
            if d * T >= 256:                # MXU M-dim filled; no need to grow further
                break
    block_b = max(1, min(block_b, B))
    while B % block_b:
        block_b -= 1
    grid = (B // block_b,)

    vmem_limit = int(min(64 << 20, max(32 << 20, 2 * live_bytes(block_b))))

    cost = pl.CostEstimate(
        flops=2 * B * T * (C * 3 * Hp + 2 * T * Hp),
        transcendentals=B * T * T,
        bytes_accessed=x_bf16.size * 2 + w_qkv.size * 2 + B * T * Hp * out_bytes,
    )

    kernel = functools.partial(head_kernel, hp=Hp)

    out_full = pl.pallas_call(
        kernel,
        out_shape=jax.ShapeDtypeStruct((B, T, Hp), out_dtype),
        grid_spec=pltpu.PrefetchScalarGridSpec(
            num_scalar_prefetch=0,
            grid=grid,
            in_specs=[
                pl.BlockSpec((block_b, T, C), lambda b: (b, 0, 0)),
                pl.BlockSpec((C, 3 * Hp), lambda b: (0, 0)),   # grid-invariant weight
            ],
            out_specs=pl.BlockSpec((block_b, T, Hp), lambda b: (b, 0, 0)),
        ),
        compiler_params=pltpu.CompilerParams(
            dimension_semantics=("parallel",),
            vmem_limit_bytes=vmem_limit,
        ),
        cost_estimate=cost,
    )(x_bf16, w_qkv)

    return out_full[..., :H]


def head_reference(x, w_key, w_query, w_value):
    """Pure-JAX f32 reference mirroring the PyTorch forward (eval mode)."""
    k = x @ w_key.T
    q = x @ w_query.T
    v = x @ w_value.T
    wei = (q @ jnp.swapaxes(k, -2, -1)) * (k.shape[-1] ** -0.5)
    T = x.shape[1]
    tril = jnp.tril(jnp.ones((T, T), dtype=bool))
    wei = jnp.where(tril, wei, -jnp.inf)
    wei = jax.nn.softmax(wei, axis=-1)
    return wei @ v


if __name__ == "__main__":
    # Small shapes consistent with the module: B=2, T=block_size=8,
    # C=n_embd=32, head_size=16, dropout=0.0 (eval mode).
    B, T, C, H = 2, 8, 32, 16
    key = jax.random.PRNGKey(0)
    kx, kk, kq, kv = jax.random.split(key, 4)

    x = jax.random.normal(kx, (B, T, C), dtype=jnp.float32)
    bound = 1.0 / (C ** 0.5)
    w_key = jax.random.uniform(kk, (H, C), jnp.float32, -bound, bound)
    w_query = jax.random.uniform(kq, (H, C), jnp.float32, -bound, bound)
    w_value = jax.random.uniform(kv, (H, C), jnp.float32, -bound, bound)

    head_fn = jax.jit(head_forward)     # weight fusion/padding happens once under jit
    out = jax.block_until_ready(head_fn(x, w_key, w_query, w_value))

    ref = head_reference(x, w_key, w_query, w_value)
    assert out.shape == (B, T, H)
    # Tolerance accounts for bf16 MXU operands (f32 accumulation, f32 softmax stats);
    # observed error is well inside this bound.
    assert jnp.allclose(out, ref, atol=3e-2, rtol=3e-2), (
        float(jnp.max(jnp.abs(out - ref))))

    print("KERNEL_OK")
</pallas_src>

<mosaic_0001>
module attributes {stable_mosaic.version = 11 : i64} {
  func.func @head_kernel(%arg0: i32, %arg1: memref<1x8x32xbf16, #tpu.memory_space<vmem>>, %arg2: memref<32x384xbf16, #tpu.memory_space<vmem>>, %arg3: memref<1x8x128xf32, #tpu.memory_space<vmem>>) attributes {dimension_semantics = [#tpu.dimension_semantics<parallel>], iteration_bounds = array<i64: 2>, scalar_prefetch = 0 : i64, scratch_operands = 0 : i64, tpu.core_type = #tpu.core_type<tc>, window_params = [{transform_indices = @transform_0, window_bounds = array<i64: 1, 8, 32>}, {pipeline_mode = #tpu.pipeline_mode<synchronous>, transform_indices = @transform_1, window_bounds = array<i64: 32, 384>}, {transform_indices = @transform_2, window_bounds = array<i64: 1, 8, 128>}]} {
    %c0 = arith.constant 0 : index
    %c0_0 = arith.constant 0 : index
    %c0_1 = arith.constant 0 : index
    %0 = vector.load %arg1[%c0, %c0_0, %c0_1] : memref<1x8x32xbf16, #tpu.memory_space<vmem>>, vector<1x8x32xbf16>
    %c0_2 = arith.constant 0 : index
    %c0_3 = arith.constant 0 : index
    %1 = vector.load %arg2[%c0_2, %c0_3] : memref<32x384xbf16, #tpu.memory_space<vmem>>, vector<32x384xbf16>
    %2 = vector.shape_cast %0 : vector<1x8x32xbf16> to vector<8x32xbf16>
    %cst = arith.constant dense<0.000000e+00> : vector<8x384xf32>
    %3 = tpu.matmul %2, %1, %cst {dimension_numbers = #tpu.dot_dimension_numbers<[1], [0], [0], [1], [0, 0, 1, 1], [], []>} : vector<8x32xbf16>, vector<32x384xbf16>, vector<8x384xf32> -> vector<8x384xf32>
    %4 = vector.extract_strided_slice %3 {offsets = [0, 0], sizes = [8, 128], strides = [1, 1]} : vector<8x384xf32> to vector<8x128xf32>
    %5 = arith.truncf %4 : vector<8x128xf32> to vector<8x128xbf16>
    %6 = vector.shape_cast %5 : vector<8x128xbf16> to vector<1x8x128xbf16>
    %7 = vector.extract_strided_slice %3 {offsets = [0, 128], sizes = [8, 128], strides = [1, 1]} : vector<8x384xf32> to vector<8x128xf32>
    %8 = arith.truncf %7 : vector<8x128xf32> to vector<8x128xbf16>
    %9 = vector.shape_cast %8 : vector<8x128xbf16> to vector<1x8x128xbf16>
    %10 = vector.extract_strided_slice %3 {offsets = [0, 256], sizes = [8, 128], strides = [1, 1]} : vector<8x384xf32> to vector<8x128xf32>
    %11 = arith.truncf %10 : vector<8x128xf32> to vector<8x128xbf16>
    %12 = vector.shape_cast %11 : vector<8x128xbf16> to vector<1x8x128xbf16>
    %cst_4 = arith.constant dense<0.000000e+00> : vector<1x8x8xf32>
    %13 = tpu.matmul %6, %9, %cst_4 {dimension_numbers = #tpu.dot_dimension_numbers<[2], [2], [1], [1], [0, 0, 0, 1, 1, 1], [0], [0]>} : vector<1x8x128xbf16>, vector<1x8x128xbf16>, vector<1x8x8xf32> -> vector<1x8x8xf32>
    %14 = tpu.iota {dimensions = array<i32: 0>} : vector<8x8xi32>
    %15 = tpu.iota {dimensions = array<i32: 1>} : vector<8x8xi32>
    %16 = arith.cmpi sle, %15, %14 : vector<8x8xi32>
    %cst_5 = arith.constant 0.000000e+00 : f32
    %cst_6 = arith.constant -1.000000e+30 : f32
    %17 = vector.broadcast %cst_5 : f32 to vector<8x8xf32>
    %18 = vector.broadcast %cst_6 : f32 to vector<8x8xf32>
    %19 = arith.select %16, %17, %18 : vector<8x8xi1>, vector<8x8xf32>
    %20 = vector.shape_cast %19 : vector<8x8xf32> to vector<1x8x8xf32>
    %21 = arith.addf %13, %20 : vector<1x8x8xf32>
    %cst_7 = arith.constant dense<0xFF800000> : vector<1x8xf32>
    %22 = vector.multi_reduction <maximumf>, %21, %cst_7 [2] : vector<1x8x8xf32> to vector<1x8xf32>
    %23 = vector.shape_cast %22 : vector<1x8xf32> to vector<1x8x1xf32>
    %24 = vector.broadcast %23 : vector<1x8x1xf32> to vector<1x8x8xf32>
    %25 = arith.subf %21, %24 : vector<1x8x8xf32>
    %26 = math.exp %25 : vector<1x8x8xf32>
    %cst_8 = arith.constant dense<0.000000e+00> : vector<1x8xf32>
    %27 = vector.multi_reduction <add>, %26, %cst_8 [2] : vector<1x8x8xf32> to vector<1x8xf32>
    %28 = vector.shape_cast %27 : vector<1x8xf32> to vector<1x8x1xf32>
    %29 = arith.truncf %26 : vector<1x8x8xf32> to vector<1x8x8xbf16>
    %cst_9 = arith.constant dense<0.000000e+00> : vector<1x8x128xf32>
    %30 = tpu.matmul %29, %12, %cst_9 {dimension_numbers = #tpu.dot_dimension_numbers<[2], [1], [1], [2], [0, 0, 0, 1, 1, 2], [0], [0]>} : vector<1x8x8xbf16>, vector<1x8x128xbf16>, vector<1x8x128xf32> -> vector<1x8x128xf32>
    %31 = tpu.reciprocal %28 : vector<1x8x1xf32> -> vector<1x8x1xf32>
    %32 = vector.broadcast %31 : vector<1x8x1xf32> to vector<1x8x128xf32>
    %33 = arith.mulf %30, %32 : vector<1x8x128xf32>
    %c0_10 = arith.constant 0 : index
    %c0_11 = arith.constant 0 : index
    %c0_12 = arith.constant 0 : index
    %34 = vector.load %arg3[%c0_10, %c0_11, %c0_12] : memref<1x8x128xf32, #tpu.memory_space<vmem>>, vector<1x8x128xf32>
    tpu.vector_store %arg3[%c0_10, %c0_11, %c0_12], %33 {strides = array<i32>} : memref<1x8x128xf32, #tpu.memory_space<vmem>>, vector<1x8x128xf32>,
    return
  }
  func.func @transform_0(%arg0: i32) -> (i32, i32, i32) {
    %c0_i32 = arith.constant 0 : i32
    %c0_i32_0 = arith.constant 0 : i32
    %c0_i32_1 = arith.constant 0 : i32
    return %arg0, %c0_i32, %c0_i32_0 : i32, i32, i32
  }
  func.func @transform_1(%arg0: i32) -> (i32, i32) {
    %c0_i32 = arith.constant 0 : i32
    %c0_i32_0 = arith.constant 0 : i32
    %c0_i32_1 = arith.constant 0 : i32
    return %c0_i32, %c0_i32_0 : i32, i32
  }
  func.func @transform_2(%arg0: i32) -> (i32, i32, i32) {
    %c0_i32 = arith.constant 0 : i32
    %c0_i32_0 = arith.constant 0 : i32
    %c0_i32_1 = arith.constant 0 : i32
    return %arg0, %c0_i32, %c0_i32_0 : i32, i32, i32
  }
}

</mosaic_0001>

<bundles_post_ra>
// kernel: head_forward.1
= control target key start
LH: loop header
LB: loop body
LE: loop exit
PB: predicated region body
PF: predicated region fallthrough
CT: control target
= control target key end

     0   :  { %7 = vsyncpa [#allocation3], 0  ;;  %s755_s0 = inlined_call_operand.vmem [shape: bf16[2,8,32], index: 0, kind: input, shape index: {}]   ;;  %s756_s1 = inlined_call_operand.vmem [shape: bf16[32,384], index: 1, kind: input, shape index: {}]   ;;  %s757_s2 = inlined_call_operand.hbm [shape: f32[2,8,128], index: 2, kind: output, shape index: {}]  }
   0x1   :  { %9 = vsyncpa [#allocation3 + $0x1], 0  ;;  %s634_s9 = smov 0   ;;  %s636_s10 = smov 0  }
   0x2   :  { %s638_s11 = smov 0   ;;  %s640_s12 = smov 0  }
   0x3 LB: > { %s655_s13 = sadd.s32 4294967295, %s612_s12   ;;  %s449_s14 = sadd.s32 4294967294, %s612_s12   ;;  %s612_s12 = sphi %s640_s12, %s763_s12   ;;  %s608_s11 = sphi %s638_s11, %s762_s11   ;;  %s604_s10 = sphi %s636_s10, %s761_s10   ;;  %s600_s9 = sphi %s634_s9, %s760_s9  }
   0x4   : > { %s659_s15 = sadd.s32 1, %s612_s12   ;;  %s69_s16 = sadd.s32 1, %s608_s11 }
   0x5   : > { %s66_s17 = ssub.s32 %s612_s12, %s659_s15  ;;  %p79_p0 = scmp.ne.s32.totalorder %s608_s11, %s604_s10 }
   0x6   : > { %p67_p1 = scmp.eq.s32.totalorder %s66_s17, 0  ;;  %p80_p2 = scmp.eq.s32.totalorder %s655_s13, 1 }
   0x7   : > { %p85_p3 = scmp.ne.s32.totalorder %s604_s10, %s600_s9  ;;  %p86_p4 = scmp.eq.s32.totalorder %s449_s14, 1 }
   0x8   : > { %s670_s18 = scalar_select %p67_p1, %s608_s11, %s69_s16  }
   0x9   : > { %p672_p5 = por %p80_p2, %p79_p0  ;;  %p676_p6 = por %p86_p4, %p85_p3 }
   0xa   : > { %p452_p7 = scmp.ge.s32.totalorder %s612_s12, 1  ;;  %p114_p8 = scmp.lt.s32.totalorder %s612_s12, 3 }
   0xc   : > { %p115_p9 = pnand %p452_p7, %p114_p8 }
   0xd   : > { %v538_v0 = vld [vmem:[%s756_s1 + $0x4] ss:$12 sps:$4 sm:$0xff] (!%p115_p9)   ;;  %p135_p10 = scmp.lt.s32.totalorder (!%p115_p9), %s655_s13, 1  ;;  %v540_v1 = vld [vmem:[%s756_s1] ss:$12 sps:$4 sm:$0xff] (!%p115_p9)   ;;  %v614_v2 = vmov (!%p115_p9), 0   ;;  %v269_v15 = vlaneseq (!%p115_p9) }
   0xe   : > { %118 = sbr.rel (%p115_p9) target bundleno = 850 (0x352), region = 28  ;;  %217 = vmatprep.mubr.bf16.mxu0 (!%p115_p9), %v614_v2  ;;  %185 = vmatprep.subr.bf16.mxu0 (!%p115_p9), %v538_v0  ;;  %v541_v3 = vld [vmem:[%s756_s1 + $0x1c] ss:$12 sps:$4 sm:$0xff] (!%p115_p9)   ;;  %v543_v4 = vld [vmem:[%s756_s1 + $0x18] ss:$12 sps:$4 sm:$0xff] (!%p115_p9)   ;;  %vm181_vm0 = vcmask (!%p115_p9), 261120  }
   0xf   : > { %186 = vmatpush1.bf16.msra.mxu0 (!%p115_p9), %v540_v1  ;;  %v615_v6 = vmov (!%p115_p9), 0.0   ;;  %vm616_vm1 = vmmov (!%p115_p9), 0   ;;  %v544_v7 = vld [vmem:[%s756_s1 + $0x8] ss:$12 sps:$4 sm:$0xff] (!%p115_p9)   ;;  %v545_v8 = vld [vmem:[%s756_s1 + $0x20] ss:$12 sps:$4 sm:$0xff] (!%p115_p9)  }
  0x10   : > { %187 = vmatprep.subr.bf16.mxu0 (!%p115_p9), %v541_v3  ;;  %475 = vmatprep.subr.bf16.mxu1 (!%p115_p9), %v615_v6  ;;  %v270_v16 = vshrl.u32 (!%p115_p9), %v269_v15, 7  ;;  %v272_v17 = vand.u32 (!%p115_p9), 127, %v269_v15  ;;  %v617_v18 = vmov (!%p115_p9), -1e+30   ;;  %vm315_vm3 = vcmask (!%p115_p9), 64512   ;;  %s132_s16 = sand.u32 (!%p115_p9), 1, %s604_s10  }
  0x11   : > { %479 = vmatprep.mubr.msk.bf16.mxu1 (!%p115_p9), %vm616_vm1, %v615_v6  ;;  %476 = vmatpush3.bf16.msra.mxu1 (!%p115_p9), %v544_v7  ;;  %vm329_vm4 = vcmask (!%p115_p9), 1043456   ;;  %s453_s17 = sshll.u32 (!%p115_p9), %s132_s16, 3  ;;  %s465_s21 = sshll.u32 (!%p115_p9), %s655_s13, 7 }
  0x12   : > { %477 = vmatprep.subr.bf16.mxu1 (!%p115_p9), %v615_v6  ;;  %vm273_vm2 = vcmp.le.s32.totalorder (!%p115_p9), %v272_v17, %v270_v16  ;;  %s134_s22 = scalar_lea.vmem (!%p115_p9), [#allocation2], %s453_s17  ;;  %s713_s26 = scalar_lea.hbm (!%p115_p9), %s757_s2, %s465_s21 }
  0x13   : > { %188 = vmatpush1.bf16.msra.mxu0 (!%p115_p9), %v543_v4  ;;  %v274_v19 = vsel (!%p115_p9), %vm273_vm2, 0.0, %v617_v18  ;;  %s390_s23 = sshll.u32 (!%p115_p9), %s134_s22, 4  ;;  %s618_s28 = smov (!%p115_p9), [#allocation2]   ;;  %s715_s23 = int_to_ptr.vmem [resolvable:$true] %s390_s23 }
  0x14   : > { %483 = vmatprep.subr.bf16.mxu0 (!%p115_p9), %v615_v6  ;;  %s550_s27 = scalar_lea.vmem (!%p115_p9), %s715_s23, 128 }
  0x15   : > { %s136_s29 = scalar_select %p135_p10, %s655_s13, 1  ;;  %478 = vmatpush3.bf16.msra.mxu1 %v545_v8 }
  0x16   : > { %489 = vmatprep.subr.bf16.mxu1 %v615_v6  ;;  %s377_s13 = scalar_lea.sflag [#allocation3], %s132_s16  ;;  %p551_p11 = scmp.ne.s32.totalorder %s715_s23, %s550_s27 }
  0x17   : > { %s454_s30 = sshll.u32 %s136_s29, 2  ;;  %s554_s29 = sshll.u32 %s618_s28, 4  ;;  %s555_s29 = int_to_ptr.vmem [resolvable:$false] %s554_s29 }
  0x18   : > { %s138_s5 = scalar_lea.vmem %s755_s0, %s454_s30  ;;  %p552_p12 = pnand %p551_p11, %p672_p5 }
  0x19   : > { %v140_v5 = vld [vmem:[%s138_s5] sm:$0xf]  ;;  %s556_s30 = scalar_lea.vmem %s555_s29, 256  ;;  %p557_p0 = scmp.lt.s32.totalorder %s715_s23, %s555_s29 }
  0x1a   : > { %461 = vmatmul.mubr.msk.bf16.vlgmr.msra.gmra.mrb[0].mxu0 %vm181_vm0, %v140_v5  ;;  %480 = vmatmul.mubr.msk.bf16.vlgmr.msra.gmra.mrb[0].mxu1 %vm181_vm0, %v140_v5  ;;  %p553_p13 = pneg %p552_p12  ;;  %p558_p1 = scmp.lt.s32.totalorder %s556_s30, %s550_s27 }
  0x1b   : > { %485 = vmatprep.mubr.msk.bf16.mxu0 %vm616_vm1, %v615_v6  ;;  %491 = vmatprep.mubr.msk.bf16.mxu1 %vm616_vm1, %v615_v6 }
  0x1c   : > { %p559_p2 = por %p558_p1, %p557_p0 }
  0x1e   : > { %p560_p3 = pnand %p559_p2, %p553_p13 }
  0xed   : > { %v219_v9 = vpop.f32.mrb[0].mxu0  ;;  %v260_v26 = vpop.f32.mrb[0].mxu1 }
  0xee   : > { %v221_v10 = vpop.f32.mrb[1].mxu0  ;;  %v266_v14 = vpack.c.bf16 %v219_v9, %v219_v9  ;;  %v268_v27 = vpack.c.bf16 %v260_v26, %v260_v26  ;;  %v481_v28 = vpop.f32.mrb[1].mxu1 }
  0xef   : > { %v267_v11 = vpack.c.bf16 %v221_v10, %v221_v10  ;;  %v223_v12 = vpop.f32.mrb[2].mxu0  ;;  %v263_v29 = vpop.f32.mrb[2].mxu1 }
  0xf0   : > { %v224_v13 = vpop.f32.mrb[3].mxu0  ;;  %v331_v30 = vsel %vm329_vm4, %v268_v27, 0  ;;  %v482_v31 = vpop.f32.mrb[3].mxu1 }
  0xf1   : > { %484 = vmatpush3.bf16.xpose.msra.mxu0 %v267_v11  ;;  %490 = vmatpush3.bf16.msra.mxu1 %v331_v30 }
  0xf8   : > { %486 = vmatmul.mubr.bf16.vlgmr.msra.gmra.mrb[4].mxu0 %v266_v14 }
 0x1cb   : > { %v309_v20 = vpop.f32.mrb[4].mxu0 }
 0x1cc   : > { %v310_v21 = vadd.f32 %v309_v20, %v274_v19  ;;  %v487_v22 = vpop.f32.mrb[5].mxu0 }
 0x1cd   : > { %v312_v23 = vpop.f32.mrb[6].mxu0 }
 0x1ce   : > { %v488_v24 = vpop.f32.mrb[7].mxu0  ;;  %v316_v25 = vsel %vm315_vm3, %v310_v21, -inf }
 0x1cf   : > { %317 = vmax.xlane.f32.xlu0 %v316_v25 }
 0x25c   : > { %v318_v32 = vpop.xlane.xlu0 %317 }
 0x25d   : > { %v319_v33 = vsub.f32 %v310_v21, %v318_v32 }
 0x25f   : > { %v320_v34 = vmul.f32 1.442695, %v319_v33 }
 0x261   : > { %546 = vpow2.f32 %v320_v34 }
 0x26b   : > { %v547_v35 = vpop.eup %546 }
 0x26c   : > { %v322_v36 = vsel %vm315_vm3, %v547_v35, 0.0  ;;  %v325_v37 = vpack.c.bf16 %v547_v35, %v547_v35 }
 0x26d   : > { %323 = vadd.xlane.f32.xlu0 %v322_v36 }
 0x26e   : > { %492 = vmatmul.mubr.msk.bf16.vlgmr.msra.gmra.mrb[4].mxu1 %vm315_vm3, %v325_v37 }
 0x2fa   : > { %v324_v38 = vpop.xlane.xlu0 %323 }
 0x2fb   : > { %548 = vrcp.f32 %v324_v38 }
 0x305   : > { %v549_v39 = vpop.eup %548 }
 0x341   : > { %v367_v40 = vpop.f32.mrb[4].mxu1 }
 0x342   : > { %v374_v41 = vmul.f32 %v549_v39, %v367_v40  ;;  %v493_v42 = vpop.f32.mrb[5].mxu1 }
 0x343   : > { %v370_v43 = vpop.f32.mrb[6].mxu1 }
 0x344   : > { %375 = vst [vmem:[%s134_s22] sm:$0xff] %v374_v41  ;;  %v494_v44 = vpop.f32.mrb[7].mxu1 }
 0x345   : > { %563 = shalt.err (!%p560_p3)
}
 0x346   : > { %s564_s3 = scalar_lea.hbm %s713_s26, 128  ;;  %s568_s6 = scalar_lea.hbm %s757_s2, 256 }
 0x347   : > { %p565_p4 = scmp.ne.s32.totalorder %s713_s26, %s564_s3  ;;  %p569_p9 = scmp.lt.u32.totalorder %s713_s26, %s757_s2 }
 0x348   : > { %p570_p10 = scmp.lt.u32.totalorder %s568_s6, %s564_s3  ;;  %p572_p12 = scmp.lt.u32.totalorder %s564_s3, %s713_s26 }
 0x349   : > { %p566_p7 = pnand %p565_p4, %p672_p5 }
 0x34a   : > { %p571_p11 = por %p570_p10, %p569_p9 }
 0x34b   : > { %p567_p8 = pneg %p566_p7 }
 0x34c   : > { %p573_p13 = por %p572_p12, %p571_p11 }
 0x34e   : > { %p574_p0 = pnand %p573_p13, %p567_p8 }
 0x350   : > { %577 = shalt.err (!%p574_p0)
}
 0x351   : > { %495 = dma.vmem_to_hbm [thread:$0]  (%p672_p5), %s715_s23, 128, %s713_s26, %s377_s13  }
 0x352 PF: > { %p501_p1 = scmp.ge.s32.totalorder %s612_s12, 2  ;;  %s402_s14 = sand.u32 1, %s600_s9  }
 0x353   : > { %s403_s16 = scalar_lea.sflag [#allocation3], %s402_s14 }
 0x354   : > { %p498_p2 = pnand %p501_p1, %p676_p6 }
 0x356   : > { %595 = dma.done.wait (!%p498_p2), %s403_s16, 128  }
 0x357   : > { %597 = vsyncadd (!%p498_p2), %s403_s16, 4294967168  ;;  %p12_p3 = scmp.ge.s32.totalorder %s659_s15, 4   ;;  %s760_s9 = smov %s604_s10 }
 0x358   : > { %s761_s10 = smov %s608_s11  ;;  %s762_s11 = smov %s670_s18 }
 0x359   : > { %s763_s12 = smov %s659_s15  ;;  %14 = sbr.rel (!%p12_p3) target bundleno = 3 (0x3), region = 63 }
 0x360   :  { %408 = vsyncpa [#allocation3], 1 }
 0x361   :  { %410 = vsyncpa [#allocation3 + $0x1], 1 }

</bundles_post_ra>
